<compile_context>
chip_gen: v7x
topology: tpu7x:2x2x1
jax: 0.10.0
libtpu: 0.0.40
codegen_flags: <defaults>
</compile_context>

<pallas_src>
import functools

import jax
import jax.numpy as jnp
from jax.experimental import pallas as pl
from jax.experimental.pallas import tpu as pltpu

_LANES = 128
# 4096 rows * 128 lanes: (5 f32 streams + 2 one-byte streams) * 2 buffers
# ~= 23 MiB of VMEM -> fits under the explicit 28 MiB limit on every gen.
_MAX_BLOCK_ROWS = 4096
_VMEM_LIMIT_BYTES = 28 << 20


def _elementwise_kernel(x_ref,
                        add_ref, sub_ref, mul_ref, div_ref,
                        gt_ref, lt_ref):
    x = x_ref[...]
    add_ref[...] = x + 5.0
    sub_ref[...] = x - 3.0
    mul_ref[...] = x * 2.0
    div_ref[...] = x * 0.25  # bit-exact x / 4 (power-of-two divisor)
    gt_ref[...] = (x > 0.0).astype(gt_ref.dtype)
    lt_ref[...] = (x < 10.0).astype(lt_ref.dtype)


def _round_up(v, m):
    return (v + m - 1) // m * m


def _pick_block_rows(rows):
    """Large, sublane-aligned row tile; >= ~4 grid steps for big inputs."""
    if rows <= _MAX_BLOCK_ROWS:
        return rows  # single full block (always legal: equals full array dim)
    # Cap so the grid has >= ~4 iterations (keeps both v7x TCs busy) while
    # staying large enough to amortize the ~0.35 us per-step pipeline cost.
    return min(_MAX_BLOCK_ROWS, max(8, _round_up(pl.cdiv(rows, 4), 8)))


# ----------------------------------------------------------------------------
# One-time probe: can Mosaic store bool outputs directly?  Decided once (cached),
# outside the jitted hot path, so no per-call try/except around the real kernel.
# ----------------------------------------------------------------------------
def _probe_kernel(x_ref, o_ref):
    o_ref[...] = (x_ref[...] > 0.0).astype(o_ref.dtype)


@functools.lru_cache(maxsize=None)
def _compare_dtype():
    try:
        out = pl.pallas_call(
            _probe_kernel,
            out_shape=jax.ShapeDtypeStruct((8, _LANES), jnp.bool_),
        )(jnp.zeros((8, _LANES), jnp.float32))
        jax.block_until_ready(out)
        return jnp.bool_
    except Exception:
        # Fallback for generations where Mosaic rejects bool memrefs: int8
        # kernel outputs + a (fused) wrapper-side cast. Semantics identical.
        return jnp.int8


def _forward_impl(x, cmp_dtype):
    orig_shape = x.shape
    n = x.size
    rows = pl.cdiv(n, _LANES)
    padded = rows * _LANES

    x_flat = x.reshape(-1)
    if padded != n:
        x_flat = jnp.pad(x_flat, (0, padded - n))
    x2d = x_flat.reshape(rows, _LANES)

    blk_rows = _pick_block_rows(rows)
    grid = (pl.cdiv(rows, blk_rows),)
    spec = pl.BlockSpec((blk_rows, _LANES), lambda i: (i, 0))
    f32 = jax.ShapeDtypeStruct((rows, _LANES), jnp.float32)
    cmp = jax.ShapeDtypeStruct((rows, _LANES), cmp_dtype)

    outs = pl.pallas_call(
        _elementwise_kernel,
        out_shape=(f32, f32, f32, f32, cmp, cmp),
        grid=grid,
        in_specs=[spec],
        out_specs=[spec] * 6,
        compiler_params=pltpu.CompilerParams(
            dimension_semantics=("parallel",),
            vmem_limit_bytes=_VMEM_LIMIT_BYTES),
        cost_estimate=pl.CostEstimate(
            flops=6 * padded,
            transcendentals=0,
            # 4B in + 4*4B f32 out + 2*1B compare out per element.
            bytes_accessed=22 * padded),
    )(x2d)

    def _unflatten(a):
        a = a.reshape(-1)
        if padded != n:
            a = a[:n]
        return a.reshape(orig_shape)

    add, sub, mul, div, gt, lt = (_unflatten(a) for a in outs)
    if gt.dtype != jnp.bool_:
        gt = gt.astype(jnp.bool_)
        lt = lt.astype(jnp.bool_)
    return add, sub, mul, div, gt, lt


_forward_jit = jax.jit(_forward_impl, static_argnames=("cmp_dtype",))


def pt_module_forward(x):
    """Replicates PtModule.forward.

    x: float32 array (any shape, e.g. NCHW).
    Returns (add, sub, mul, div, gt, lt) with the same shape; gt/lt are bool.
    """
    return _forward_jit(x, cmp_dtype=_compare_dtype())


if __name__ == "__main__":
    key = jax.random.PRNGKey(0)
    # Small NCHW input consistent with a typical module call.
    x = jax.random.normal(key, (2, 4, 16, 16), dtype=jnp.float32) * 6.0

    outs = pt_module_forward(x)
    outs = jax.block_until_ready(outs)

    add, sub, mul, div, gt, lt = outs
    # Reference check in plain JAX.
    assert jnp.allclose(add, x + 5)
    assert jnp.allclose(sub, x - 3)
    assert jnp.allclose(mul, x * 2)
    assert jnp.allclose(div, x / 4)   # x * 0.25 is bit-exact for /4
    assert jnp.array_equal(gt, x > 0)
    assert jnp.array_equal(lt, x < 10)
    assert gt.dtype == jnp.bool_ and lt.dtype == jnp.bool_

    print("KERNEL_OK")
</pallas_src>

<mosaic_0001>
module attributes {stable_mosaic.version = 11 : i64} {
  func.func @_probe_kernel(%arg0: memref<8x128xf32, #tpu.memory_space<vmem>>, %arg1: memref<8x128xi32, #tpu.memory_space<vmem>>) attributes {dimension_semantics = [], scalar_prefetch = 0 : i64, scratch_operands = 0 : i64, tpu.core_type = #tpu.core_type<tc>} {
    %c0 = arith.constant 0 : index
    %c0_0 = arith.constant 0 : index
    %0 = vector.load %arg0[%c0, %c0_0] : memref<8x128xf32, #tpu.memory_space<vmem>>, vector<8x128xf32>
    %cst = arith.constant 0.000000e+00 : f32
    %1 = vector.broadcast %cst : f32 to vector<8x128xf32>
    %2 = arith.cmpf ogt, %0, %1 : vector<8x128xf32>
    %c0_1 = arith.constant 0 : index
    %c0_2 = arith.constant 0 : index
    %3 = vector.load %arg1[%c0_1, %c0_2] : memref<8x128xi32, #tpu.memory_space<vmem>>, vector<8x128xi32>
    %4 = arith.extui %2 : vector<8x128xi1> to vector<8x128xi32>
    %cst_3 = arith.constant dense<0> : vector<8x128xi32>
    %5 = arith.cmpi ne, %3, %cst_3 : vector<8x128xi32>
    tpu.vector_store %arg1[%c0_1, %c0_2], %4 {strides = array<i32>} : memref<8x128xi32, #tpu.memory_space<vmem>>, vector<8x128xi32>,
    return
  }
}

module attributes {stable_mosaic.version = 11 : i64} {
  func.func @_elementwise_kernel(%arg0: i32, %arg1: memref<16x128xf32, #tpu.memory_space<vmem>>, %arg2: memref<16x128xf32, #tpu.memory_space<vmem>>, %arg3: memref<16x128xf32, #tpu.memory_space<vmem>>, %arg4: memref<16x128xf32, #tpu.memory_space<vmem>>, %arg5: memref<16x128xf32, #tpu.memory_space<vmem>>, %arg6: memref<16x128xi8, #tpu.memory_space<vmem>>, %arg7: memref<16x128xi8, #tpu.memory_space<vmem>>) attributes {dimension_semantics = [#tpu.dimension_semantics<parallel>], iteration_bounds = array<i64: 1>, scalar_prefetch = 0 : i64, scratch_operands = 0 : i64, tpu.core_type = #tpu.core_type<tc>, window_params = [{transform_indices = @transform_0, window_bounds = array<i64: 16, 128>}, {transform_indices = @transform_1, window_bounds = array<i64: 16, 128>}, {transform_indices = @transform_2, window_bounds = array<i64: 16, 128>}, {transform_indices = @transform_3, window_bounds = array<i64: 16, 128>}, {transform_indices = @transform_4, window_bounds = array<i64: 16, 128>}, {transform_indices = @transform_5, window_bounds = array<i64: 16, 128>}, {transform_indices = @transform_6, window_bounds = array<i64: 16, 128>}]} {
    %c0 = arith.constant 0 : index
    %c0_0 = arith.constant 0 : index
    %0 = vector.load %arg1[%c0, %c0_0] : memref<16x128xf32, #tpu.memory_space<vmem>>, vector<16x128xf32>
    %cst = arith.constant 5.000000e+00 : f32
    %1 = vector.broadcast %cst : f32 to vector<16x128xf32>
    %2 = arith.addf %0, %1 : vector<16x128xf32>
    %c0_1 = arith.constant 0 : index
    %c0_2 = arith.constant 0 : index
    %3 = vector.load %arg2[%c0_1, %c0_2] : memref<16x128xf32, #tpu.memory_space<vmem>>, vector<16x128xf32>
    tpu.vector_store %arg2[%c0_1, %c0_2], %2 {strides = array<i32>} : memref<16x128xf32, #tpu.memory_space<vmem>>, vector<16x128xf32>,
    %cst_3 = arith.constant 3.000000e+00 : f32
    %4 = vector.broadcast %cst_3 : f32 to vector<16x128xf32>
    %5 = arith.subf %0, %4 : vector<16x128xf32>
    %c0_4 = arith.constant 0 : index
    %c0_5 = arith.constant 0 : index
    %6 = vector.load %arg3[%c0_4, %c0_5] : memref<16x128xf32, #tpu.memory_space<vmem>>, vector<16x128xf32>
    tpu.vector_store %arg3[%c0_4, %c0_5], %5 {strides = array<i32>} : memref<16x128xf32, #tpu.memory_space<vmem>>, vector<16x128xf32>,
    %cst_6 = arith.constant 2.000000e+00 : f32
    %7 = vector.broadcast %cst_6 : f32 to vector<16x128xf32>
    %8 = arith.mulf %0, %7 : vector<16x128xf32>
    %c0_7 = arith.constant 0 : index
    %c0_8 = arith.constant 0 : index
    %9 = vector.load %arg4[%c0_7, %c0_8] : memref<16x128xf32, #tpu.memory_space<vmem>>, vector<16x128xf32>
    tpu.vector_store %arg4[%c0_7, %c0_8], %8 {strides = array<i32>} : memref<16x128xf32, #tpu.memory_space<vmem>>, vector<16x128xf32>,
    %cst_9 = arith.constant 2.500000e-01 : f32
    %10 = vector.broadcast %cst_9 : f32 to vector<16x128xf32>
    %11 = arith.mulf %0, %10 : vector<16x128xf32>
    %c0_10 = arith.constant 0 : index
    %c0_11 = arith.constant 0 : index
    %12 = vector.load %arg5[%c0_10, %c0_11] : memref<16x128xf32, #tpu.memory_space<vmem>>, vector<16x128xf32>
    tpu.vector_store %arg5[%c0_10, %c0_11], %11 {strides = array<i32>} : memref<16x128xf32, #tpu.memory_space<vmem>>, vector<16x128xf32>,
    %cst_12 = arith.constant 0.000000e+00 : f32
    %13 = vector.broadcast %cst_12 : f32 to vector<16x128xf32>
    %14 = arith.cmpf ogt, %0, %13 : vector<16x128xf32>
    %15 = arith.extui %14 : vector<16x128xi1> to vector<16x128xi8>
    %c0_13 = arith.constant 0 : index
    %c0_14 = arith.constant 0 : index
    %16 = vector.load %arg6[%c0_13, %c0_14] : memref<16x128xi8, #tpu.memory_space<vmem>>, vector<16x128xi8>
    tpu.vector_store %arg6[%c0_13, %c0_14], %15 {strides = array<i32>} : memref<16x128xi8, #tpu.memory_space<vmem>>, vector<16x128xi8>,
    %cst_15 = arith.constant 1.000000e+01 : f32
    %17 = vector.broadcast %cst_15 : f32 to vector<16x128xf32>
    %18 = arith.cmpf olt, %0, %17 : vector<16x128xf32>
    %19 = arith.extui %18 : vector<16x128xi1> to vector<16x128xi8>
    %c0_16 = arith.constant 0 : index
    %c0_17 = arith.constant 0 : index
    %20 = vector.load %arg7[%c0_16, %c0_17] : memref<16x128xi8, #tpu.memory_space<vmem>>, vector<16x128xi8>
    tpu.vector_store %arg7[%c0_16, %c0_17], %19 {strides = array<i32>} : memref<16x128xi8, #tpu.memory_space<vmem>>, vector<16x128xi8>,
    return
  }
  func.func @transform_0(%arg0: i32) -> (i32, i32) {
    %c0_i32 = arith.constant 0 : i32
    %c0_i32_0 = arith.constant 0 : i32
    return %arg0, %c0_i32 : i32, i32
  }
  func.func @transform_1(%arg0: i32) -> (i32, i32) {
    %c0_i32 = arith.constant 0 : i32
    %c0_i32_0 = arith.constant 0 : i32
    return %arg0, %c0_i32 : i32, i32
  }
  func.func @transform_2(%arg0: i32) -> (i32, i32) {
    %c0_i32 = arith.constant 0 : i32
    %c0_i32_0 = arith.constant 0 : i32
    return %arg0, %c0_i32 : i32, i32
  }
  func.func @transform_3(%arg0: i32) -> (i32, i32) {
    %c0_i32 = arith.constant 0 : i32
    %c0_i32_0 = arith.constant 0 : i32
    return %arg0, %c0_i32 : i32, i32
  }
  func.func @transform_4(%arg0: i32) -> (i32, i32) {
    %c0_i32 = arith.constant 0 : i32
    %c0_i32_0 = arith.constant 0 : i32
    return %arg0, %c0_i32 : i32, i32
  }
  func.func @transform_5(%arg0: i32) -> (i32, i32) {
    %c0_i32 = arith.constant 0 : i32
    %c0_i32_0 = arith.constant 0 : i32
    return %arg0, %c0_i32 : i32, i32
  }
  func.func @transform_6(%arg0: i32) -> (i32, i32) {
    %c0_i32 = arith.constant 0 : i32
    %c0_i32_0 = arith.constant 0 : i32
    return %arg0, %c0_i32 : i32, i32
  }
}

</mosaic_0001>

<bundles_post_ra>
// kernel: tpu_custom_call.1
= control target key start
LH: loop header
LB: loop body
LE: loop exit
PB: predicated region body
PF: predicated region fallthrough
CT: control target
= control target key end

     0   :  { %6 = vsyncpa [#allocation3], 0  ;;  %s55_s6 = smov [#allocation2]   ;;  %s82_s0 = inlined_call_operand.hbm [shape: f32[8,128], index: 0, kind: input, shape index: {}]   ;;  %s83_s1 = inlined_call_operand.vmem [shape: s32[8,128], index: 1, kind: output, shape index: {}]  }
   0x1   :  { %s13_s7 = sshll.u32 %s55_s6, 4  ;;  %s31_s10 = scalar_lea.hbm %s82_s0, 128  ;;  %s14_s7 = int_to_ptr.vmem [resolvable:$true] %s13_s7 }
   0x2   :  { %p32_p0 = scmp.ne.s32.totalorder %s82_s0, %s31_s10  ;;  %p35_p1 = scmp.lt.u32.totalorder %s31_s10, %s82_s0 }
   0x4   :  { %p37_p2 = pnand %p35_p1, %p32_p0 }
   0x6   :  { %40 = shalt.err (!%p37_p2)
}
   0x7   :  { %s41_s15 = scalar_lea.vmem %s14_s7, 128  ;;  %p46_p4 = scmp.lt.s32.totalorder %s14_s7, %s14_s7 }
   0x8   :  { %p42_p3 = scmp.ne.s32.totalorder %s14_s7, %s41_s15  ;;  %p47_p5 = scmp.lt.s32.totalorder %s41_s15, %s41_s15 }
   0xa   :  { %p48_p6 = por %p47_p5, %p46_p4 }
   0xc   :  { %p49_p7 = pnand %p48_p6, %p42_p3 }
   0xe   :  { %52 = shalt.err (!%p49_p7)
}
   0xf   :  { %16 = dma.hbm_to_vmem [thread:$0]  %s82_s0, 128, %s14_s7, [#allocation3]  }
  0x10   :  { %53 = dma.done.wait [#allocation3], 128  }
  0x11   :  { %54 = vsyncadd [#allocation3], 4294967168  ;;  %v20_v0 = vld [vmem:[#allocation2] sm:$0xff]  ;;  %v56_v1 = vmov 0  }
  0x12   :  { %vm21_vm0 = vcmp.gt.f32.partialorder %v20_v0, 0.0 }
  0x13   :  { %v22_v2 = vsel %vm21_vm0, 1, %v56_v1 }
  0x14   :  { %23 = vst [vmem:[%s83_s1] sm:$0xff] %v22_v2 }
  0x15   :  { %28 = vsyncpa [#allocation3], 1 }

// kernel: _forward_impl.1
= control target key start
LH: loop header
LB: loop body
LE: loop exit
PB: predicated region body
PF: predicated region fallthrough
CT: control target
= control target key end

     0   :  { %v87_v10 = vmov 0   ;;  %s165_s0 = inlined_call_operand.vmem [shape: f32[16,128], index: 0, kind: input, shape index: {}]   ;;  %s166_s1 = inlined_call_operand.vmem [shape: f32[16,128], index: 1, kind: output, shape index: {0}]   ;;  %s167_s2 = inlined_call_operand.vmem [shape: f32[16,128], index: 2, kind: output, shape index: {1}]   ;;  %s168_s3 = inlined_call_operand.vmem [shape: f32[16,128], index: 3, kind: output, shape index: {2}]   ;;  %s169_s4 = inlined_call_operand.vmem [shape: f32[16,128], index: 4, kind: output, shape index: {3}]   ;;  %s170_s5 = inlined_call_operand.vmem [shape: s8[16,128], index: 5, kind: output, shape index: {4}]   ;;  %s171_s6 = inlined_call_operand.vmem [shape: s8[16,128], index: 6, kind: output, shape index: {5}]  }
   0x1   :  { %v16_v0 = vld [vmem:[%s165_s0] sm:$0xff]  ;;  %v17_v1 = vld [vmem:[%s165_s0 + $0x8] sm:$0xff] }
   0x2   :  { %v18_v2 = vadd.f32 5.0, %v16_v0  ;;  %v19_v3 = vadd.f32 5.0, %v17_v1  ;;  %v84_v4 = vadd.f32 -3.0, %v16_v0  ;;  %v85_v5 = vadd.f32 -3.0, %v17_v1 }
   0x3   :  { %v26_v6 = vmul.f32 2.0, %v16_v0  ;;  %v27_v7 = vmul.f32 2.0, %v17_v1  ;;  %v30_v8 = vmul.f32 0.25, %v16_v0  ;;  %v31_v9 = vmul.f32 0.25, %v17_v1 }
   0x4   :  { %20 = vst [vmem:[%s166_s1] sm:$0xff] %v18_v2  ;;  %21 = vst [vmem:[%s166_s1 + $0x8] sm:$0xff] %v19_v3  ;;  %vm34_vm0 = vcmp.gt.f32.partialorder %v16_v0, 0.0  ;;  %vm35_vm1 = vcmp.gt.f32.partialorder %v17_v1, 0.0  ;;  %vm47_vm2 = vcmp.lt.f32.partialorder %v16_v0, 10.0  ;;  %vm48_vm3 = vcmp.lt.f32.partialorder %v17_v1, 10.0 }
   0x5   :  { %24 = vst [vmem:[%s167_s2] sm:$0xff] %v84_v4  ;;  %25 = vst [vmem:[%s167_s2 + $0x8] sm:$0xff] %v85_v5 }
   0x6   :  { %28 = vst [vmem:[%s168_s3] sm:$0xff] %v26_v6  ;;  %29 = vst [vmem:[%s168_s3 + $0x8] sm:$0xff] %v27_v7 }
   0x7   :  { %32 = vst [vmem:[%s169_s4] sm:$0xff] %v30_v8  ;;  %33 = vst [vmem:[%s169_s4 + $0x8] sm:$0xff] %v31_v9 }
   0x8   :  { %vm36_vm4 = vmpackc.low %vm35_vm1, %vm34_vm0 }
   0x9   :  { %vm37_vm5 = vmpackc.even %vm36_vm4, %vm36_vm4 }
   0xa   :  { %v38_v11 = vsel %vm37_vm5, 16843009, %v87_v10  ;;  %vm49_vm6 = vmpackc.low %vm48_vm3, %vm47_vm2 }
   0xb   :  { %v39_v12 = vunpack.c.0.s8 %v38_v11  ;;  %v40_v13 = vunpack.c.1.s8 %v38_v11  ;;  %vm50_vm7 = vmpackc.even %vm49_vm6, %vm49_vm6 }
   0xc   :  { %v51_v14 = vsel %vm50_vm7, 16843009, %v87_v10 }
   0xd   :  { %v41_v15 = vpack.c.b16 %v39_v12, %v39_v12  ;;  %v43_v16 = vpack.c.b16 %v40_v13, %v40_v13  ;;  %v52_v17 = vunpack.c.0.s8 %v51_v14  ;;  %v53_v18 = vunpack.c.1.s8 %v51_v14 }
   0xf   :  { %v42_v19 = vpack.c.b8 %v41_v15, %v41_v15  ;;  %v44_v20 = vpack.c.b8 %v43_v16, %v43_v16  ;;  %v54_v21 = vpack.c.b16 %v52_v17, %v52_v17  ;;  %v56_v22 = vpack.c.b16 %v53_v18, %v53_v18 }
  0x11   :  { %45 = vst [vmem:[%s170_s5] sm:$0x3] %v42_v19  ;;  %46 = vst [vmem:[%s170_s5 + $0x2] sm:$0x3] %v44_v20  ;;  %v55_v23 = vpack.c.b8 %v54_v21, %v54_v21  ;;  %v57_v24 = vpack.c.b8 %v56_v22, %v56_v22 }
  0x13   :  { %58 = vst [vmem:[%s171_s6] sm:$0x3] %v55_v23  ;;  %59 = vst [vmem:[%s171_s6 + $0x2] sm:$0x3] %v57_v24 }

</bundles_post_ra>
